<compile_context>
chip_gen: v5e
topology: v5e:2x2
jax: 0.10.0
libtpu: 0.0.40
codegen_flags: <defaults>
</compile_context>

<pallas_src>
import functools

import jax
import jax.numpy as jnp
from jax.experimental import pallas as pl
from jax.experimental.pallas import tpu as pltpu


# --------------------------------------------------------------------------- #
# Helpers
# --------------------------------------------------------------------------- #

def _round_up(x: int, m: int) -> int:
    return ((x + m - 1) // m) * m


def _pad_to(a, shape):
    if tuple(a.shape) == tuple(shape):
        return a
    return jnp.pad(a, [(0, t - s) for s, t in zip(a.shape, shape)])


def _vmem_capacity_bytes() -> int:
    """Physical VMEM of the attached TPU (fallback: 64 MiB = v7x per-TC)."""
    try:
        cap = getattr(pltpu.get_tpu_info(), "vmem_capacity_bytes", None)
        if cap:
            return int(cap)
    except Exception:
        pass
    return 64 << 20


# --------------------------------------------------------------------------- #
# Kernels
# --------------------------------------------------------------------------- #

def _mlp_resident_kernel(x_ref, w1_ref, b1_ref, w2_ref, b2_ref, o_ref):
    """Whole layer per row tile; W1/W2 stay VMEM-resident across the grid."""
    h = jnp.dot(x_ref[...], w1_ref[...], preferred_element_type=jnp.float32)
    h = jnp.maximum(h + b1_ref[...], 0.0)
    # TODO(synk): training-mode dropout would apply a Bernoulli mask here via
    #             pltpu.prng_seed / pltpu.prng_random_bits; eval-mode dropout
    #             (nn.Dropout in .eval()) is the identity, which is implemented.
    y = jnp.dot(h.astype(w2_ref.dtype), w2_ref[...],
                preferred_element_type=jnp.float32)
    o_ref[...] = (y + b2_ref[...]).astype(o_ref.dtype)


def _mlp_tiled_kernel(x_ref, w1_ref, b1_ref, w2_ref, b2_ref, o_ref, acc_ref):
    """Hidden-axis-tiled fallback with an f32 accumulator (very large layers)."""
    k = pl.program_id(1)

    @pl.when(k == 0)
    def _init():
        acc_ref[...] = jnp.zeros_like(acc_ref)

    h = jnp.dot(x_ref[...], w1_ref[...], preferred_element_type=jnp.float32)
    h = jnp.maximum(h + b1_ref[...], 0.0)
    acc_ref[...] += jnp.dot(h.astype(w2_ref.dtype), w2_ref[...],
                            preferred_element_type=jnp.float32)

    @pl.when(k == pl.num_programs(1) - 1)
    def _finalize():
        o_ref[...] = (acc_ref[...] + b2_ref[...]).astype(o_ref.dtype)


# --------------------------------------------------------------------------- #
# Planning (M-independent layout + M-dependent row tile)
# --------------------------------------------------------------------------- #

def _plan_layout(in_f, hidden, itemsize, tm_max, th_max, variant):
    in_pad = _round_up(in_f, 128)
    hid_pad = _round_up(hidden, 128)
    budget = int(_vmem_capacity_bytes() * 0.8)          # planning budget
    tm_max = max(256, (min(tm_max, 2048) // 256) * 256)

    def resident_bytes(tm_):
        return (2 * 2 * tm_ * in_pad * itemsize          # x + out, double-buffered
                + 2 * 2 * in_pad * hid_pad * itemsize    # W1 + W2 (conservative 2x)
                + 2 * (hid_pad + in_pad) * 4             # biases (f32)
                + tm_ * hid_pad * 4)                     # f32 intermediate h

    def tiled_bytes(tm_, th_):
        return (2 * 2 * tm_ * in_pad * itemsize          # x + out
                + 2 * 2 * in_pad * th_ * itemsize        # W1 + W2 tiles
                + 2 * (th_ + in_pad) * 4                 # biases
                + tm_ * in_pad * 4                       # f32 accumulator
                + tm_ * th_ * 4)                         # f32 intermediate h

    if variant == "auto":
        variant = "resident" if resident_bytes(256) <= budget else "tiled"

    if variant == "resident":
        tm = tm_max
        while tm > 256 and resident_bytes(tm) > budget:
            tm -= 256
        return dict(variant="resident", in_pad=in_pad, hid_pad=hid_pad,
                    th=hid_pad, tm_max=tm)

    th = max(128, min((max(th_max, 128) // 128) * 128, hid_pad))
    tm = tm_max
    while th > 128 and tiled_bytes(tm, th) > budget:
        th -= 128
    while tm > 256 and tiled_bytes(tm, th) > budget:
        tm -= 256
    return dict(variant="tiled", in_pad=in_pad, hid_pad=_round_up(hidden, th),
                th=th, tm_max=tm)


def _pick_tm(M, tm_max, itemsize):
    sub = 16 if itemsize < 4 else 8          # bf16 packs 16 sublanes / vreg
    if M <= 256:
        return max(sub, _round_up(M, sub))   # single, sublane-aligned tile
    tm = tm_max
    # Keep >= 2 row tiles so the "parallel" axis can feed both v7x TensorCores.
    while tm > 256 and -(-M // tm) < 2:
        tm -= 256
    return tm


def _prepare_params(w1, b1, w2, b2, dtype, in_pad, hid_pad):
    w1p = _pad_to(w1.astype(dtype), (in_pad, hid_pad))
    w2p = _pad_to(w2.astype(dtype), (hid_pad, in_pad))
    # Biases stay f32: they are added to the f32 accumulators in-kernel.
    b1p = _pad_to(b1.astype(jnp.float32).reshape(1, -1), (1, hid_pad))
    b2p = _pad_to(b2.astype(jnp.float32).reshape(1, -1), (1, in_pad))
    return w1p, b1p, w2p, b2p


# --------------------------------------------------------------------------- #
# pallas_call wrappers
# --------------------------------------------------------------------------- #

def _call_pallas(xp, w1p, b1p, w2p, b2p, layout, tm, out_dtype):
    m_pad, in_pad = xp.shape
    hid_pad = w1p.shape[1]
    th = layout["th"]
    vmem_limit = int(_vmem_capacity_bytes() * 0.85)   # generation-aware cap

    if layout["variant"] == "resident":
        return pl.pallas_call(
            _mlp_resident_kernel,
            out_shape=jax.ShapeDtypeStruct((m_pad, in_pad), out_dtype),
            grid_spec=pltpu.PrefetchScalarGridSpec(
                num_scalar_prefetch=0,
                grid=(m_pad // tm,),
                in_specs=[
                    pl.BlockSpec((tm, in_pad), lambda i: (i, 0)),       # x rows
                    pl.BlockSpec((in_pad, hid_pad), lambda i: (0, 0)),  # W1 resident
                    pl.BlockSpec((1, hid_pad), lambda i: (0, 0)),       # b1 resident
                    pl.BlockSpec((hid_pad, in_pad), lambda i: (0, 0)),  # W2 resident
                    pl.BlockSpec((1, in_pad), lambda i: (0, 0)),        # b2 resident
                ],
                out_specs=pl.BlockSpec((tm, in_pad), lambda i: (i, 0)),
            ),
            compiler_params=pltpu.CompilerParams(
                dimension_semantics=("parallel",),
                vmem_limit_bytes=vmem_limit,
            ),
        )(xp, w1p, b1p, w2p, b2p)

    # Fallback: hidden-axis reduction with an f32 accumulator.
    return pl.pallas_call(
        _mlp_tiled_kernel,
        out_shape=jax.ShapeDtypeStruct((m_pad, in_pad), out_dtype),
        grid_spec=pltpu.PrefetchScalarGridSpec(
            num_scalar_prefetch=0,
            grid=(m_pad // tm, hid_pad // th),
            in_specs=[
                pl.BlockSpec((tm, in_pad), lambda i, k: (i, 0)),   # x row tile
                pl.BlockSpec((in_pad, th), lambda i, k: (0, k)),   # W1 hidden tile
                pl.BlockSpec((1, th), lambda i, k: (0, k)),        # b1 hidden tile
                pl.BlockSpec((th, in_pad), lambda i, k: (k, 0)),   # W2 hidden tile
                pl.BlockSpec((1, in_pad), lambda i, k: (0, 0)),    # b2 (resident)
            ],
            out_specs=pl.BlockSpec((tm, in_pad), lambda i, k: (i, 0)),
            scratch_shapes=[pltpu.VMEM((tm, in_pad), jnp.float32)],
        ),
        compiler_params=pltpu.CompilerParams(
            dimension_semantics=("parallel", "arbitrary"),
            vmem_limit_bytes=vmem_limit,
        ),
    )(xp, w1p, b1p, w2p, b2p)


# --------------------------------------------------------------------------- #
# Public API
# --------------------------------------------------------------------------- #

def make_mlp(w1, b1, w2, b2, *, dtype=None, tm=1024, th=1024, variant="auto"):
    """Prepare (cast + pad) the weights ONCE and return a jitted forward(x).

    forward(x) == relu(x @ w1 + b1) @ w2 + b2   (dropout = eval-mode identity)

    w1: [in_f, hidden]  (fc1.weight transposed)    b1: [hidden]
    w2: [hidden, in_f]  (fc2.weight transposed)    b2: [in_f]
    """
    in_f, hidden = w1.shape
    dtype = jnp.dtype(dtype) if dtype is not None else jnp.dtype(w1.dtype)

    layout = _plan_layout(in_f, hidden, dtype.itemsize, tm, th, variant)
    params = _prepare_params(w1, b1, w2, b2, dtype,
                             layout["in_pad"], layout["hid_pad"])

    @jax.jit
    def fwd(x, w1p, b1p, w2p, b2p):
        lead = x.shape[:-1]
        x2 = x.reshape(-1, in_f).astype(dtype)
        M = x2.shape[0]
        tm_eff = _pick_tm(M, layout["tm_max"], dtype.itemsize)
        m_pad = _round_up(M, tm_eff)
        xp = _pad_to(x2, (m_pad, layout["in_pad"]))
        outp = _call_pallas(xp, w1p, b1p, w2p, b2p, layout, tm_eff, dtype)
        if (m_pad, layout["in_pad"]) != (M, in_f):
            outp = outp[:M, :in_f]
        return outp.reshape(*lead, in_f)

    return functools.partial(fwd, w1p=params[0], b1p=params[1],
                             w2p=params[2], b2p=params[3])


def mlp_forward(x, w1, b1, w2, b2, *, dtype=None, tm=1024, th=1024,
                variant="auto"):
    """One-off convenience wrapper (for hot paths, prefer make_mlp())."""
    compute_dtype = dtype if dtype is not None else x.dtype
    return make_mlp(w1, b1, w2, b2, dtype=compute_dtype, tm=tm, th=th,
                    variant=variant)(x)


def mlp_reference(x, w1, b1, w2, b2):
    h = jnp.maximum(x @ w1 + b1, 0.0)
    return h @ w2 + b2


# --------------------------------------------------------------------------- #
# Self-test
# --------------------------------------------------------------------------- #

if __name__ == "__main__":
    # Small shapes consistent with the module: batch=2, seq=8 tokens,
    # in_features=32, hidden_features=64.  (Production ViT shapes like 768/3072
    # with M in the thousands use the resident-weight path with tm=1024.)
    batch, seq = 2, 8
    in_features, hidden_features = 32, 64

    key = jax.random.PRNGKey(0)
    kx, k1, k2, k3, k4 = jax.random.split(key, 5)

    x = jax.random.normal(kx, (batch, seq, in_features), jnp.float32)
    # PyTorch Linear params (fc1.weight [hidden, in], fc2.weight [in, hidden])
    # stored pre-transposed for row-major matmuls.
    w1 = jax.random.normal(k1, (in_features, hidden_features), jnp.float32) * 0.05
    b1 = jax.random.normal(k2, (hidden_features,), jnp.float32) * 0.05
    w2 = jax.random.normal(k3, (hidden_features, in_features), jnp.float32) * 0.05
    b2 = jax.random.normal(k4, (in_features,), jnp.float32) * 0.05

    x2d = x.reshape(batch * seq, in_features)
    ref = mlp_reference(x2d, w1, b1, w2, b2)

    # f32, resident-weight variant (default / typical path).
    out_f32 = mlp_forward(x2d, w1, b1, w2, b2)
    jax.block_until_ready(out_f32)
    assert out_f32.shape == (batch * seq, in_features)
    assert jnp.allclose(out_f32, ref, atol=1e-5, rtol=1e-5), "f32 resident mismatch"

    # f32, hidden-tiled fallback (forced) — exercises the accumulator path.
    out_tiled = mlp_forward(x2d, w1, b1, w2, b2, variant="tiled")
    jax.block_until_ready(out_tiled)
    assert jnp.allclose(out_tiled, ref, atol=1e-5, rtol=1e-5), "f32 tiled mismatch"

    # bf16 activations/weights with f32 accumulation; weights cast+padded once
    # via make_mlp (hoisted out of the hot path), called on the 3-D input.
    mlp_bf16 = make_mlp(w1, b1, w2, b2, dtype=jnp.bfloat16)
    out_bf16 = mlp_bf16(x.astype(jnp.bfloat16))
    jax.block_until_ready(out_bf16)
    assert out_bf16.shape == (batch, seq, in_features)
    assert jnp.allclose(
        out_bf16.astype(jnp.float32).reshape(batch * seq, in_features),
        ref, atol=5e-2, rtol=5e-2), "bf16 mismatch vs reference"

    print("KERNEL_OK")
</pallas_src>

<mosaic_0001>
module attributes {stable_mosaic.version = 11 : i64} {
  func.func @_mlp_resident_kernel(%arg0: i32, %arg1: memref<16x128xf32, #tpu.memory_space<vmem>>, %arg2: memref<128x128xf32, #tpu.memory_space<vmem>>, %arg3: memref<1x128xf32, #tpu.memory_space<vmem>>, %arg4: memref<128x128xf32, #tpu.memory_space<vmem>>, %arg5: memref<1x128xf32, #tpu.memory_space<vmem>>, %arg6: memref<16x128xf32, #tpu.memory_space<vmem>>) attributes {dimension_semantics = [#tpu.dimension_semantics<parallel>], iteration_bounds = array<i64: 1>, scalar_prefetch = 0 : i64, scratch_operands = 0 : i64, tpu.core_type = #tpu.core_type<tc>, window_params = [{transform_indices = @transform_0, window_bounds = array<i64: 16, 128>}, {pipeline_mode = #tpu.pipeline_mode<synchronous>, transform_indices = @transform_1, window_bounds = array<i64: 128, 128>}, {pipeline_mode = #tpu.pipeline_mode<synchronous>, transform_indices = @transform_2, window_bounds = array<i64: 1, 128>}, {pipeline_mode = #tpu.pipeline_mode<synchronous>, transform_indices = @transform_3, window_bounds = array<i64: 128, 128>}, {pipeline_mode = #tpu.pipeline_mode<synchronous>, transform_indices = @transform_4, window_bounds = array<i64: 1, 128>}, {transform_indices = @transform_5, window_bounds = array<i64: 16, 128>}]} {
    %c0 = arith.constant 0 : index
    %c0_0 = arith.constant 0 : index
    %0 = vector.load %arg1[%c0, %c0_0] : memref<16x128xf32, #tpu.memory_space<vmem>>, vector<16x128xf32>
    %c0_1 = arith.constant 0 : index
    %c0_2 = arith.constant 0 : index
    %1 = vector.load %arg2[%c0_1, %c0_2] : memref<128x128xf32, #tpu.memory_space<vmem>>, vector<128x128xf32>
    %cst = arith.constant dense<0.000000e+00> : vector<16x128xf32>
    %2 = tpu.matmul %0, %1, %cst {dimension_numbers = #tpu.dot_dimension_numbers<[1], [0], [0], [1], [0, 0, 1, 1], [], []>} : vector<16x128xf32>, vector<128x128xf32>, vector<16x128xf32> -> vector<16x128xf32>
    %c0_3 = arith.constant 0 : index
    %c0_4 = arith.constant 0 : index
    %3 = vector.load %arg3[%c0_3, %c0_4] : memref<1x128xf32, #tpu.memory_space<vmem>>, vector<1x128xf32>
    %4 = vector.broadcast %3 : vector<1x128xf32> to vector<16x128xf32>
    %5 = arith.addf %2, %4 : vector<16x128xf32>
    %cst_5 = arith.constant 0.000000e+00 : f32
    %6 = vector.broadcast %cst_5 : f32 to vector<16x128xf32>
    %7 = arith.maximumf %5, %6 : vector<16x128xf32>
    %c0_6 = arith.constant 0 : index
    %c0_7 = arith.constant 0 : index
    %8 = vector.load %arg4[%c0_6, %c0_7] : memref<128x128xf32, #tpu.memory_space<vmem>>, vector<128x128xf32>
    %cst_8 = arith.constant dense<0.000000e+00> : vector<16x128xf32>
    %9 = tpu.matmul %7, %8, %cst_8 {dimension_numbers = #tpu.dot_dimension_numbers<[1], [0], [0], [1], [0, 0, 1, 1], [], []>} : vector<16x128xf32>, vector<128x128xf32>, vector<16x128xf32> -> vector<16x128xf32>
    %c0_9 = arith.constant 0 : index
    %c0_10 = arith.constant 0 : index
    %10 = vector.load %arg5[%c0_9, %c0_10] : memref<1x128xf32, #tpu.memory_space<vmem>>, vector<1x128xf32>
    %11 = vector.broadcast %10 : vector<1x128xf32> to vector<16x128xf32>
    %12 = arith.addf %9, %11 : vector<16x128xf32>
    %c0_11 = arith.constant 0 : index
    %c0_12 = arith.constant 0 : index
    %13 = vector.load %arg6[%c0_11, %c0_12] : memref<16x128xf32, #tpu.memory_space<vmem>>, vector<16x128xf32>
    tpu.vector_store %arg6[%c0_11, %c0_12], %12 {strides = array<i32>} : memref<16x128xf32, #tpu.memory_space<vmem>>, vector<16x128xf32>,
    return
  }
  func.func @transform_0(%arg0: i32) -> (i32, i32) {
    %c0_i32 = arith.constant 0 : i32
    %c0_i32_0 = arith.constant 0 : i32
    return %arg0, %c0_i32 : i32, i32
  }
  func.func @transform_1(%arg0: i32) -> (i32, i32) {
    %c0_i32 = arith.constant 0 : i32
    %c0_i32_0 = arith.constant 0 : i32
    %c0_i32_1 = arith.constant 0 : i32
    return %c0_i32, %c0_i32_0 : i32, i32
  }
  func.func @transform_2(%arg0: i32) -> (i32, i32) {
    %c0_i32 = arith.constant 0 : i32
    %c0_i32_0 = arith.constant 0 : i32
    %c0_i32_1 = arith.constant 0 : i32
    return %c0_i32, %c0_i32_0 : i32, i32
  }
  func.func @transform_3(%arg0: i32) -> (i32, i32) {
    %c0_i32 = arith.constant 0 : i32
    %c0_i32_0 = arith.constant 0 : i32
    %c0_i32_1 = arith.constant 0 : i32
    return %c0_i32, %c0_i32_0 : i32, i32
  }
  func.func @transform_4(%arg0: i32) -> (i32, i32) {
    %c0_i32 = arith.constant 0 : i32
    %c0_i32_0 = arith.constant 0 : i32
    %c0_i32_1 = arith.constant 0 : i32
    return %c0_i32, %c0_i32_0 : i32, i32
  }
  func.func @transform_5(%arg0: i32) -> (i32, i32) {
    %c0_i32 = arith.constant 0 : i32
    %c0_i32_0 = arith.constant 0 : i32
    return %arg0, %c0_i32 : i32, i32
  }
}

</mosaic_0001>

<bundles_post_ra>
// kernel: fwd.1
= control target key start
LH: loop header
LB: loop body
LE: loop exit
PB: predicated region body
PF: predicated region fallthrough
CT: control target
= control target key end

     0   :  { %10 = vsyncpa [#allocation3], 0  ;;  %s347_s0 = inlined_call_operand.vmem [shape: f32[16,128], index: 0, kind: input, shape index: {}]   ;;  %s348_s1 = inlined_call_operand.hbm [shape: f32[128,128], index: 1, kind: input, shape index: {}]   ;;  %s349_s2 = inlined_call_operand.vmem [shape: f32[1,128], index: 2, kind: input, shape index: {}]   ;;  %s350_s3 = inlined_call_operand.hbm [shape: f32[128,128], index: 3, kind: input, shape index: {}]   ;;  %s351_s4 = inlined_call_operand.vmem [shape: f32[1,128], index: 4, kind: input, shape index: {}]   ;;  %s352_s5 = inlined_call_operand.hbm [shape: f32[16,128], index: 5, kind: output, shape index: {}]  }
   0x1   :  { %11 = vsyncpa [#allocation6], 0 }
   0x2   :  { %12 = vsyncpa [#allocation4], 0  ;;  %s19_s20 = sshll.u32 %s348_s1, 4  ;;  %s282_s21 = smov [#allocation2]   ;;  %s20_s20 = int_to_ptr.hbm [resolvable:$true] %s19_s20 }
   0x3   :  { %s21_s22 = sshll.u32 %s282_s21, 4  ;;  %s34_s25 = sshll.u32 %s350_s3, 4  ;;  %s22_s22 = int_to_ptr.vmem [resolvable:$true] %s21_s22  ;;  %s35_s25 = int_to_ptr.hbm [resolvable:$true] %s34_s25 }
   0x4   :  { %s283_s26 = smov 128   ;;  %s284_s27 = smov 8  }
   0x5   :  { %27 = dma.hbm_to_vmem [thread:$0]  %s20_s20, 2048, %s22_s22, [#allocation3], %s283_s26, %s283_s26, %s284_s27  }
   0x6   :  { %s285_s28 = smov [#allocation5]  }
   0x7   :  { %s36_s29 = sshll.u32 %s285_s28, 4  ;;  %s37_s29 = int_to_ptr.vmem [resolvable:$true] %s36_s29 }
   0x8   :  { %42 = dma.hbm_to_vmem [thread:$0]  %s35_s25, 2048, %s37_s29, [#allocation6], %s283_s26, %s283_s26, %s284_s27  }
   0x9   :  { %276 = dma.done.wait [#allocation3], 2048  }
   0xa   :  { %277 = vsyncadd [#allocation3], 4294965248 }
   0xb   :  { %278 = dma.done.wait [#allocation6], 2048  }
   0xc   :  { %279 = vsyncadd [#allocation6], 4294965248  ;;  %v70_v0 = vld [vmem:[#allocation2 + $0x78] sm:$0xff]  ;;  %v69_v1 = vld [vmem:[#allocation2 + $0x70] sm:$0xff]  ;;  %s286_s10 = smov [#allocation7]  }
   0xd   :  { %165 = vmatpush.msra.mxu2 %v70_v0  ;;  %75 = vmatpush.msra.mxu0 %v70_v0  ;;  %v68_v2 = vld [vmem:[#allocation2 + $0x68] sm:$0xff]  ;;  %v67_v3 = vld [vmem:[#allocation2 + $0x60] sm:$0xff]  ;;  %v66_v4 = vld [vmem:[#allocation2 + $0x58] sm:$0xff]  ;;  %s149_s11 = sshll.u32 %s286_s10, 4  ;;  %s150_s11 = int_to_ptr.vmem [resolvable:$true] %s149_s11 }
   0xe   :  { %v115_v5 = vld [vmem:[#allocation5 + $0x78] sm:$0xff]  ;;  %v114_v6 = vld [vmem:[#allocation5 + $0x70] sm:$0xff]  ;;  %v113_v8 = vld [vmem:[#allocation5 + $0x68] sm:$0xff] }
   0xf   :  { %166 = vmatpush.msra.mxu2 %v69_v1  ;;  %76 = vmatpush.msra.mxu0 %v69_v1  ;;  %v65_v7 = vld [vmem:[#allocation2 + $0x50] sm:$0xff]  ;;  %v64_v9 = vld [vmem:[#allocation2 + $0x48] sm:$0xff]  ;;  %v112_v10 = vld [vmem:[#allocation5 + $0x60] sm:$0xff] }
  0x10   :  { %181 = vmatpush.msra.mxu3 %v115_v5  ;;  %120 = vmatpush.msra.mxu1 %v115_v5  ;;  %v63_v11 = vld [vmem:[#allocation2 + $0x40] sm:$0xff]  ;;  %v111_v12 = vld [vmem:[#allocation5 + $0x58] sm:$0xff]  ;;  %v110_v14 = vld [vmem:[#allocation5 + $0x50] sm:$0xff] }
  0x11   :  { %167 = vmatpush.msra.mxu2 %v68_v2  ;;  %77 = vmatpush.msra.mxu0 %v68_v2  ;;  %v62_v13 = vld [vmem:[#allocation2 + $0x38] sm:$0xff]  ;;  %v61_v15 = vld [vmem:[#allocation2 + $0x30] sm:$0xff]  ;;  %v109_v16 = vld [vmem:[#allocation5 + $0x48] sm:$0xff] }
  0x12   :  { %182 = vmatpush.msra.mxu3 %v114_v6  ;;  %121 = vmatpush.msra.mxu1 %v114_v6  ;;  %v60_v17 = vld [vmem:[#allocation2 + $0x28] sm:$0xff]  ;;  %v108_v18 = vld [vmem:[#allocation5 + $0x40] sm:$0xff]  ;;  %v107_v20 = vld [vmem:[#allocation5 + $0x38] sm:$0xff] }
  0x13   :  { %168 = vmatpush.msra.mxu2 %v67_v3  ;;  %78 = vmatpush.msra.mxu0 %v67_v3  ;;  %v59_v19 = vld [vmem:[#allocation2 + $0x20] sm:$0xff]  ;;  %v58_v21 = vld [vmem:[#allocation2 + $0x18] sm:$0xff]  ;;  %v106_v22 = vld [vmem:[#allocation5 + $0x30] sm:$0xff] }
  0x14   :  { %183 = vmatpush.msra.mxu3 %v113_v8  ;;  %122 = vmatpush.msra.mxu1 %v113_v8  ;;  %v57_v23 = vld [vmem:[#allocation2 + $0x10] sm:$0xff]  ;;  %v105_v24 = vld [vmem:[#allocation5 + $0x28] sm:$0xff]  ;;  %v104_v26 = vld [vmem:[#allocation5 + $0x20] sm:$0xff] }
  0x15   :  { %169 = vmatpush.msra.mxu2 %v66_v4  ;;  %79 = vmatpush.msra.mxu0 %v66_v4  ;;  %v56_v25 = vld [vmem:[#allocation2 + $0x8] sm:$0xff]  ;;  %v55_v27 = vld [vmem:[#allocation2] sm:$0xff]  ;;  %v103_v30 = vld [vmem:[#allocation5 + $0x18] sm:$0xff] }
  0x16   :  { %184 = vmatpush.msra.mxu3 %v112_v10  ;;  %123 = vmatpush.msra.mxu1 %v112_v10  ;;  %v54_v28 = vld [vmem:[%s347_s0 + $0x8] sm:$0xff]  ;;  %v53_v29 = vld [vmem:[%s347_s0] sm:$0xff]  ;;  %v102_v31 = vld [vmem:[#allocation5 + $0x10] sm:$0xff] }
  0x17   :  { %170 = vmatpush.msra.mxu2 %v65_v7  ;;  %80 = vmatpush.msra.mxu0 %v65_v7  ;;  %v101_v32 = vld [vmem:[#allocation5 + $0x8] sm:$0xff]  ;;  %v100_v33 = vld [vmem:[#allocation5] sm:$0xff] }
  0x18   :  { %185 = vmatpush.msra.mxu3 %v111_v12  ;;  %124 = vmatpush.msra.mxu1 %v111_v12  ;;  %v202_v34 = vld [vmem:[%s349_s2] ss:$0 sm:$0xff]  ;;  %s151_s2 = sshll.u32 %s352_s5, 4  ;;  %s152_s2 = int_to_ptr.hbm [resolvable:$true] %s151_s2 }
  0x19   :  { %171 = vmatpush.msra.mxu2 %v64_v9  ;;  %81 = vmatpush.msra.mxu0 %v64_v9  ;;  %v203_v41 = vld [vmem:[%s351_s4] ss:$0 sm:$0xff] }
  0x1a   :  { %186 = vmatpush.msra.mxu3 %v110_v14  ;;  %125 = vmatpush.msra.mxu1 %v110_v14 }
  0x1b   :  { %172 = vmatpush.msra.mxu2 %v63_v11  ;;  %82 = vmatpush.msra.mxu0 %v63_v11 }
  0x1c   :  { %187 = vmatpush.msra.mxu3 %v109_v16  ;;  %126 = vmatpush.msra.mxu1 %v109_v16 }
  0x1d   :  { %173 = vmatpush.msra.mxu2 %v62_v13  ;;  %83 = vmatpush.msra.mxu0 %v62_v13 }
  0x1e   :  { %188 = vmatpush.msra.mxu3 %v108_v18  ;;  %127 = vmatpush.msra.mxu1 %v108_v18 }
  0x1f   :  { %174 = vmatpush.msra.mxu2 %v61_v15  ;;  %84 = vmatpush.msra.mxu0 %v61_v15 }
  0x20   :  { %189 = vmatpush.msra.mxu3 %v107_v20  ;;  %128 = vmatpush.msra.mxu1 %v107_v20 }
  0x21   :  { %175 = vmatpush.msra.mxu2 %v60_v17  ;;  %85 = vmatpush.msra.mxu0 %v60_v17 }
  0x22   :  { %190 = vmatpush.msra.mxu3 %v106_v22  ;;  %129 = vmatpush.msra.mxu1 %v106_v22 }
  0x23   :  { %176 = vmatpush.msra.mxu2 %v59_v19  ;;  %86 = vmatpush.msra.mxu0 %v59_v19 }
  0x24   :  { %191 = vmatpush.msra.mxu3 %v105_v24  ;;  %130 = vmatpush.msra.mxu1 %v105_v24 }
  0x25   :  { %177 = vmatpush.msra.mxu2 %v58_v21  ;;  %87 = vmatpush.msra.mxu0 %v58_v21 }
  0x26   :  { %192 = vmatpush.msra.mxu3 %v104_v26  ;;  %131 = vmatpush.msra.mxu1 %v104_v26 }
  0x27   :  { %178 = vmatpush.msra.mxu2 %v57_v23  ;;  %88 = vmatpush.msra.mxu0 %v57_v23 }
  0x28   :  { %193 = vmatpush.msra.mxu3 %v103_v30  ;;  %132 = vmatpush.msra.mxu1 %v103_v30 }
  0x29   :  { %179 = vmatpush.msra.mxu2 %v56_v25  ;;  %89 = vmatpush.msra.mxu0 %v56_v25 }
  0x2a   :  { %194 = vmatpush.msra.mxu3 %v102_v31  ;;  %133 = vmatpush.msra.mxu1 %v102_v31 }
  0x2b   :  { %180 = vmatpush.msra.mxu2 %v55_v27  ;;  %90 = vmatpush.msra.mxu0 %v55_v27 }
  0x2c   :  { %94 = vmatmul.f32.vlgmr.msra.gmra.mxu2 %v54_v28  ;;  %91 = vmatmul.f32.vlgmr.msra.gmra.mxu0 %v53_v29 }
  0x2d   :  { %195 = vmatpush.msra.mxu3 %v101_v32  ;;  %134 = vmatpush.msra.mxu1 %v101_v32 }
  0x2f   :  { %196 = vmatpush.msra.mxu3 %v100_v33  ;;  %135 = vmatpush.msra.mxu1 %v100_v33 }
  0xa9   :  { %v92_v35 = vpop.f32.mrf.mxu0 }
  0xaa   :  { %v93_v36 = vadd.f32 %v202_v34, %v92_v35 }
  0xac   :  { %v98_v37 = vmax.f32 %v93_v36, 0.0 }
  0xae   :  { %136 = vmatmul.f32.vlgmr.msra.gmra.mxu1 %v98_v37 }
  0xaf   :  { %v95_v38 = vpop.f32.mrf.mxu2 }
  0xb0   :  { %v96_v39 = vadd.f32 %v202_v34, %v95_v38 }
  0xb2   :  { %v99_v40 = vmax.f32 %v96_v39, 0.0 }
  0xb4   :  { %139 = vmatmul.f32.vlgmr.msra.gmra.mxu3 %v99_v40 }
 0x12b   :  { %v137_v42 = vpop.f32.mrf.mxu1 }
 0x12c   :  { %v138_v43 = vadd.f32 %v203_v41, %v137_v42 }
 0x12e   :  { %143 = vst [vmem:[#allocation7] sm:$0xff] %v138_v43 }
 0x137   :  { %v140_v44 = vpop.f32.mrf.mxu3 }
 0x138   :  { %v141_v45 = vadd.f32 %v203_v41, %v140_v44 }
 0x13a   :  { %144 = vst [vmem:[#allocation7 + $0x8] sm:$0xff] %v141_v45 }
 0x13b   :  { %157 = dma.vmem_to_hbm [thread:$0]  %s150_s11, 256, %s152_s2, [#allocation4], %s283_s26, %s283_s26, %s284_s27  }
 0x13c   :  { %280 = dma.done.wait [#allocation4], 256  }
 0x13d   :  { %281 = vsyncadd [#allocation4], 4294967040 }
 0x13e   :  { %162 = vsyncpa [#allocation3], 1 }
 0x13f   :  { %163 = vsyncpa [#allocation6], 1 }
 0x140   :  { %164 = vsyncpa [#allocation4], 1 }

</bundles_post_ra>
